<compile_context>
chip_gen: v7x
topology: tpu7x:2x2x1
jax: 0.10.0
libtpu: 0.0.40
codegen_flags: <defaults>
</compile_context>

<pallas_src>
import functools
import time

import jax
import jax.numpy as jnp
from jax.experimental import pallas as pl
from jax.experimental.pallas import tpu as pltpu


def _round_up(n, m):
    return ((n + m - 1) // m) * m


@functools.lru_cache(maxsize=None)
def _vmem_budgets():
    """Generation-aware VMEM numbers: (vmem_limit_bytes, per-block byte budget)."""
    try:
        cap = int(pltpu.get_tpu_info().vmem_capacity_bytes)
    except Exception:
        cap = 64 * 1024 * 1024  # conservative fallback (v7x-sized VMEM)
    # Leave half of physical VMEM as headroom (on v7x both TensorCores are active when
    # the grid axis is 'parallel'); budget ~3/4 of the scoped limit for one pipelined
    # block (2x input + 2x output buffers + scratch).
    #   v5e/v6e (128 MiB): limit 64 MiB, block budget 48 MiB
    #   v7x     ( 64 MiB): limit 32 MiB, block budget 24 MiB
    vmem_limit = cap // 2
    block_budget = (vmem_limit * 3) // 4
    return vmem_limit, block_budget


def _choose_plane_tile(P, r_in, r_out, L_in, L_out, block_budget):
    """Largest divisor of P satisfying the VMEM budget, >=2 grid steps, unroll cap."""
    per_plane = 4 * 2 * (r_in * L_in + r_out * L_out)  # f32, double-buffered in + out
    cap_vmem = max(1, block_budget // max(1, per_plane))
    cap_steps = max(1, P // 2)   # guarantee >=2 grid steps so v7x's 2nd core has work
    cap_unroll = 8               # bound the in-kernel per-plane unrolled loop
    cap = max(1, min(cap_vmem, cap_steps, cap_unroll))
    pt = 1
    for d in range(1, min(P, cap) + 1):
        if P % d == 0:
            pt = d
    return pt


def _conv_act_kernel(t_ref, x_ref, o_ref, stage_ref, *, k, Hc, r_out, activation):
    """Shared-kernel 'full' conv (k banded-Toeplitz MXU matmuls) + activation.

    t_ref     : (k, L_in, L_out) bf16 Toeplitz bank, one banded matrix per kernel row.
    x_ref     : (PT, r_in, L_in) f32 input planes; logical data in [:, :H, :W], zeros
                elsewhere (guaranteed by the padded inter-layer layout).
    o_ref     : (PT, r_out, L_out) f32 output planes; logical data in
                [:, :h_out, :w_out], zeros elsewhere (invariant kept for next layer).
    stage_ref : (2, R_stage, L_in) f32 per-plane row-padded staging, double-buffered
                so one plane's fill stores can overlap the previous plane's matmuls.
    """
    pad = k - 1
    PT, _, L_in = x_ref.shape
    _, R_stage, _ = stage_ref.shape
    L_out = o_ref.shape[-1]

    # Halo-only zeroing (review item 2): the interior rows [pad, pad+Hc) are fully
    # overwritten per plane, so only the top/bottom halo rows ever need zeros.
    for slot in range(2):
        stage_ref[slot, 0:pad, :] = jnp.zeros((pad, L_in), jnp.float32)
        if pad + Hc < R_stage:
            stage_ref[slot, pad + Hc:R_stage, :] = jnp.zeros(
                (R_stage - pad - Hc, L_in), jnp.float32)

    for pt in range(PT):
        slot = pt % 2
        # Single row-padded copy of this plane (review item 1).  The lane halo/shift
        # is handled entirely by the Toeplitz band, so only rows need padding.
        stage_ref[slot, pad:pad + Hc, :] = x_ref[pt, 0:Hc, :]

        # scipy 'full' conv:  out[i, j] = sum_rw sum_n x[i - rw, n] * w[rw, j - n]
        # Each kernel row rw is one (r_out, L_in) x (L_in, L_out) bf16 MXU matmul with
        # f32 accumulation (review item 3); the live accumulator is one plane only.
        acc = jnp.zeros((r_out, L_out), jnp.float32)
        for rw in range(k):
            off = pad - rw                                   # row offset into staging
            lhs = stage_ref[slot, off:off + r_out, :].astype(jnp.bfloat16)
            acc = acc + jnp.dot(lhs, t_ref[rw],
                                preferred_element_type=jnp.float32)

        if activation == "mish":
            # mish(x) = x * tanh(softplus(x)).  With y = exp(min(x, 20)):
            #   tanh(softplus(x)) = ((1+y)^2 - 1) / ((1+y)^2 + 1)
            # exp sits on the EUP slot; approx reciprocal + one Newton step keeps the
            # activation at ~f32 accuracy (the bf16 matmul dominates the error).
            y = jnp.exp(jnp.minimum(acc, 20.0))
            z = 1.0 + y
            z2 = z * z
            den = z2 + 1.0
            r = pl.reciprocal(den, approx=True)
            r = r * (2.0 - den * r)
            out = acc * (z2 - 1.0) * r
        elif activation == "leaky":
            out = jnp.where(acc >= 0.0, acc, 0.01 * acc)     # PyTorch default slope
        else:
            out = acc

        # Full-width, sublane/lane-dense store; padding regions stay exactly zero
        # (mish(0) = leaky(0) = 0), preserving the inter-layer invariant.
        o_ref[pt] = out.astype(o_ref.dtype)


def _toeplitz_bank(kernel, L_in, L_out, W, w_out):
    """Banded Toeplitz bank T with T[rw, n, j] = w[rw, j - n] on the valid band.

    Multiplying an (rows, L_in) slab of the row-padded input by T[rw] performs the
    lane-direction leg of the 'full' convolution for kernel row rw.  The (n < W) and
    (j < w_out) masks keep the lane padding of both input and output exactly zero.
    """
    k = kernel.shape[0]
    n = jnp.arange(L_in)[:, None]
    j = jnp.arange(L_out)[None, :]
    d = j - n
    valid = (d >= 0) & (d < k) & (n < W) & (j < w_out)
    bank = kernel[:, jnp.clip(d, 0, k - 1)] * valid[None, :, :].astype(kernel.dtype)
    return bank.astype(jnp.bfloat16)


@functools.partial(jax.jit, static_argnames=("H", "W", "activation"))
def conv_layer_pallas(x_padded, kernel, *, H, W, activation):
    """One ConvLayer on the padded inter-layer layout.

    x_padded : (P, r_in, L_in) f32, logical plane data in [:, :H, :W], zeros elsewhere.
    kernel   : (k, k) f32 shared kernel.
    returns  : (P, r_out, L_out) f32, logical data in [:, :H+k-1, :W+k-1], zeros
               elsewhere.
    """
    P, r_in, L_in = x_padded.shape
    k = int(kernel.shape[0])
    pad = k - 1
    h_out, w_out = H + pad, W + pad
    r_out = _round_up(h_out, 8)                   # sublane-dense output rows
    L_out = max(128, _round_up(w_out, 128))       # lane-dense output width
    Hc = min(r_in, _round_up(H, 8))               # rows copied into staging
    R_stage = r_out + pad                         # row-padded staging height
    assert L_in >= _round_up(W, 128) and w_out <= L_out

    t_bank = _toeplitz_bank(kernel, L_in, L_out, W, w_out)

    vmem_limit, block_budget = _vmem_budgets()
    PT = _choose_plane_tile(P, r_in, r_out, L_in, L_out, block_budget)
    # TODO(synk): at real YOLO resolutions the planes should additionally be tiled
    #             along H/W (with a (k-1) halo) so the per-plane accumulator and the
    #             staging slab stay within a few vregs / a small VMEM footprint.

    return pl.pallas_call(
        functools.partial(_conv_act_kernel, k=k, Hc=Hc, r_out=r_out,
                          activation=activation),
        out_shape=jax.ShapeDtypeStruct((P, r_out, L_out), x_padded.dtype),
        grid=(P // PT,),
        in_specs=[
            pl.BlockSpec((k, L_in, L_out), lambda i: (0, 0, 0)),   # Toeplitz bank
            pl.BlockSpec((PT, r_in, L_in), lambda i: (i, 0, 0)),   # input planes
        ],
        out_specs=pl.BlockSpec((PT, r_out, L_out), lambda i: (i, 0, 0)),
        scratch_shapes=[pltpu.VMEM((2, R_stage, L_in), jnp.float32)],
        compiler_params=pltpu.CompilerParams(
            # Planes are independent -> shardable across v7x's two TensorCores.
            dimension_semantics=("parallel",),
            vmem_limit_bytes=vmem_limit,
        ),
    )(t_bank, x_padded)


def _ref_conv_layer(x, kernel, activation):
    """Pure-JAX f32 reference of the assumed 'full'-conv + activation semantics."""
    B, C, H, W = x.shape
    k = kernel.shape[0]
    pad = k - 1
    h_out, w_out = H + pad, W + pad
    xp = jnp.pad(x, ((0, 0), (0, 0), (pad, pad), (pad, pad)))
    acc = jnp.zeros((B, C, h_out, w_out), jnp.float32)
    for p in range(k):
        for q in range(k):
            acc = acc + xp[:, :, p:p + h_out, q:q + w_out] * kernel[k - 1 - p, k - 1 - q]
    if activation == "mish":
        sp = jnp.where(acc > 20.0, acc, jnp.log1p(jnp.exp(jnp.minimum(acc, 20.0))))
        return acc * jnp.tanh(sp)
    if activation == "leaky":
        return jnp.where(acc >= 0.0, acc, 0.01 * acc)
    return acc


class YOLOv4Pallas:
    """Mirror of the PyTorch YOLOv4 module: a list of shared-kernel ConvLayers."""

    def __init__(self, config, key):
        self.layers = []
        in_channels = 3
        for layer in config:
            if layer["type"] == "convolutional":
                kernel_size = int(layer["size"])
                key, sub = jax.random.split(key)
                # Deterministic stand-in for torch.randn(kernel_size, kernel_size)
                kern = jax.random.normal(sub, (kernel_size, kernel_size), jnp.float32)
                self.layers.append((kern, layer["activation"]))
                in_channels = int(layer["filters"])  # parity only; unused in forward

    def __call__(self, x):
        B, C, H, W = x.shape
        P = B * C
        # One-time import into the lane/sublane-padded inter-layer layout; the
        # per-layer HBM slice round trip is gone (review item 7): pad once here,
        # slice once at the end.
        r0 = _round_up(H, 8)
        L0 = max(128, _round_up(W, 128))
        xp = jnp.pad(x.reshape(P, H, W), ((0, 0), (0, r0 - H), (0, L0 - W)))
        xp = jax.block_until_ready(xp)

        # Per-layer host-side wall-clock timing, as in the PyTorch reference.
        # (First call per layer shape includes jit compile time.)
        layer_times = []
        for kern, act in self.layers:
            t0 = time.time()
            xp = conv_layer_pallas(xp, kern, H=H, W=W, activation=act)
            jax.block_until_ready(xp)
            layer_times.append(time.time() - t0)
            k = int(kern.shape[0])
            H, W = H + k - 1, W + k - 1

        out = xp[:, :H, :W].reshape(B, C, H, W)
        return out, layer_times


if __name__ == "__main__":
    config = [
        {"type": "convolutional", "filters": "8", "size": "3", "stride": "1",
         "pad": "1", "activation": "mish"},
        {"type": "convolutional", "filters": "16", "size": "5", "stride": "1",
         "pad": "1", "activation": "leaky"},
    ]

    key = jax.random.PRNGKey(0)
    key, xkey = jax.random.split(key)
    x = jax.random.normal(xkey, (2, 3, 16, 16), jnp.float32)  # NCHW, like PyTorch

    model = YOLOv4Pallas(config, key)
    out, layer_times = model(x)
    out = jax.block_until_ready(out)

    # Shape check: 16 -> 18 (k=3, full) -> 22 (k=5, full), channels unchanged.
    assert out.shape == (2, 3, 22, 22), out.shape
    assert len(layer_times) == len(config)

    # Numerical check against a pure-f32 reference of the assumed semantics.  The
    # Pallas kernel's MXU matmuls use bf16 inputs with f32 accumulation (per the
    # performance review), so the tolerance is scale-aware at bf16 level rather than
    # the previous 2e-3 absolute bound.
    ref = x
    for kern, act in model.layers:
        ref = _ref_conv_layer(ref, kern, act)
    scale = float(jnp.maximum(1.0, jnp.max(jnp.abs(ref))))
    max_err = float(jnp.max(jnp.abs(out - ref)))
    assert max_err <= 3e-2 * scale, (max_err, scale)

    print("KERNEL_OK")
</pallas_src>

<mosaic_0001>
module attributes {stable_mosaic.version = 11 : i64} {
  func.func @_conv_act_kernel(%arg0: i32, %arg1: memref<3x128x128xbf16, #tpu.memory_space<vmem>>, %arg2: memref<3x16x128xf32, #tpu.memory_space<vmem>>, %arg3: memref<3x24x128xf32, #tpu.memory_space<vmem>>, %arg4: memref<2x26x128xf32, #tpu.memory_space<vmem>>) attributes {dimension_semantics = [#tpu.dimension_semantics<parallel>], iteration_bounds = array<i64: 2>, scalar_prefetch = 0 : i64, scratch_operands = 1 : i64, tpu.core_type = #tpu.core_type<tc>, window_params = [{pipeline_mode = #tpu.pipeline_mode<synchronous>, transform_indices = @transform_0, window_bounds = array<i64: 3, 128, 128>}, {transform_indices = @transform_1, window_bounds = array<i64: 3, 16, 128>}, {transform_indices = @transform_2, window_bounds = array<i64: 3, 24, 128>}]} {
    %cst = arith.constant 0.000000e+00 : f32
    %0 = vector.broadcast %cst : f32 to vector<2x128xf32>
    %c0 = arith.constant 0 : index
    %c0_0 = arith.constant 0 : index
    %c0_1 = arith.constant 0 : index
    %1 = vector.load %arg4[%c0, %c0_0, %c0_1] : memref<2x26x128xf32, #tpu.memory_space<vmem>>, vector<1x2x128xf32>
    %2 = vector.shape_cast %1 : vector<1x2x128xf32> to vector<2x128xf32>
    %3 = vector.shape_cast %0 : vector<2x128xf32> to vector<1x2x128xf32>
    tpu.vector_store %arg4[%c0, %c0_0, %c0_1], %3 {strides = array<i32>} : memref<2x26x128xf32, #tpu.memory_space<vmem>>, vector<1x2x128xf32>,
    %cst_2 = arith.constant 0.000000e+00 : f32
    %4 = vector.broadcast %cst_2 : f32 to vector<8x128xf32>
    %c0_3 = arith.constant 0 : index
    %c18 = arith.constant 18 : index
    %c0_4 = arith.constant 0 : index
    %5 = vector.load %arg4[%c0_3, %c18, %c0_4] : memref<2x26x128xf32, #tpu.memory_space<vmem>>, vector<1x8x128xf32>
    %6 = vector.shape_cast %5 : vector<1x8x128xf32> to vector<8x128xf32>
    %7 = vector.shape_cast %4 : vector<8x128xf32> to vector<1x8x128xf32>
    tpu.vector_store %arg4[%c0_3, %c18, %c0_4], %7 {strides = array<i32>} : memref<2x26x128xf32, #tpu.memory_space<vmem>>, vector<1x8x128xf32>,
    %cst_5 = arith.constant 0.000000e+00 : f32
    %8 = vector.broadcast %cst_5 : f32 to vector<2x128xf32>
    %c1 = arith.constant 1 : index
    %c0_6 = arith.constant 0 : index
    %c0_7 = arith.constant 0 : index
    %9 = vector.load %arg4[%c1, %c0_6, %c0_7] : memref<2x26x128xf32, #tpu.memory_space<vmem>>, vector<1x2x128xf32>
    %10 = vector.shape_cast %9 : vector<1x2x128xf32> to vector<2x128xf32>
    %11 = vector.shape_cast %8 : vector<2x128xf32> to vector<1x2x128xf32>
    tpu.vector_store %arg4[%c1, %c0_6, %c0_7], %11 {strides = array<i32>} : memref<2x26x128xf32, #tpu.memory_space<vmem>>, vector<1x2x128xf32>,
    %cst_8 = arith.constant 0.000000e+00 : f32
    %12 = vector.broadcast %cst_8 : f32 to vector<8x128xf32>
    %c1_9 = arith.constant 1 : index
    %c18_10 = arith.constant 18 : index
    %c0_11 = arith.constant 0 : index
    %13 = vector.load %arg4[%c1_9, %c18_10, %c0_11] : memref<2x26x128xf32, #tpu.memory_space<vmem>>, vector<1x8x128xf32>
    %14 = vector.shape_cast %13 : vector<1x8x128xf32> to vector<8x128xf32>
    %15 = vector.shape_cast %12 : vector<8x128xf32> to vector<1x8x128xf32>
    tpu.vector_store %arg4[%c1_9, %c18_10, %c0_11], %15 {strides = array<i32>} : memref<2x26x128xf32, #tpu.memory_space<vmem>>, vector<1x8x128xf32>,
    %c0_12 = arith.constant 0 : index
    %c0_13 = arith.constant 0 : index
    %c0_14 = arith.constant 0 : index
    %16 = vector.load %arg2[%c0_12, %c0_13, %c0_14] : memref<3x16x128xf32, #tpu.memory_space<vmem>>, vector<1x16x128xf32>
    %17 = vector.shape_cast %16 : vector<1x16x128xf32> to vector<16x128xf32>
    %c0_15 = arith.constant 0 : index
    %c2 = arith.constant 2 : index
    %c0_16 = arith.constant 0 : index
    %18 = vector.load %arg4[%c0_15, %c2, %c0_16] : memref<2x26x128xf32, #tpu.memory_space<vmem>>, vector<1x16x128xf32>
    %19 = vector.shape_cast %18 : vector<1x16x128xf32> to vector<16x128xf32>
    %20 = vector.shape_cast %17 : vector<16x128xf32> to vector<1x16x128xf32>
    tpu.vector_store %arg4[%c0_15, %c2, %c0_16], %20 {strides = array<i32>} : memref<2x26x128xf32, #tpu.memory_space<vmem>>, vector<1x16x128xf32>,
    %cst_17 = arith.constant 0.000000e+00 : f32
    %21 = vector.broadcast %cst_17 : f32 to vector<24x128xf32>
    %c0_18 = arith.constant 0 : index
    %c2_19 = arith.constant 2 : index
    %c0_20 = arith.constant 0 : index
    %22 = vector.load %arg4[%c0_18, %c2_19, %c0_20] : memref<2x26x128xf32, #tpu.memory_space<vmem>>, vector<1x24x128xf32>
    %23 = vector.shape_cast %22 : vector<1x24x128xf32> to vector<24x128xf32>
    %24 = arith.truncf %23 : vector<24x128xf32> to vector<24x128xbf16>
    %c0_21 = arith.constant 0 : index
    %c0_22 = arith.constant 0 : index
    %c0_23 = arith.constant 0 : index
    %25 = vector.load %arg1[%c0_21, %c0_22, %c0_23] : memref<3x128x128xbf16, #tpu.memory_space<vmem>>, vector<1x128x128xbf16>
    %26 = vector.shape_cast %25 : vector<1x128x128xbf16> to vector<128x128xbf16>
    %cst_24 = arith.constant dense<0.000000e+00> : vector<24x128xf32>
    %27 = tpu.matmul %24, %26, %cst_24 {dimension_numbers = #tpu.dot_dimension_numbers<[1], [0], [0], [1], [0, 0, 1, 1], [], []>} : vector<24x128xbf16>, vector<128x128xbf16>, vector<24x128xf32> -> vector<24x128xf32>
    %28 = arith.addf %21, %27 : vector<24x128xf32>
    %c0_25 = arith.constant 0 : index
    %c1_26 = arith.constant 1 : index
    %c0_27 = arith.constant 0 : index
    %29 = vector.load %arg4[%c0_25, %c1_26, %c0_27] : memref<2x26x128xf32, #tpu.memory_space<vmem>>, vector<1x24x128xf32>
    %30 = vector.shape_cast %29 : vector<1x24x128xf32> to vector<24x128xf32>
    %31 = arith.truncf %30 : vector<24x128xf32> to vector<24x128xbf16>
    %c1_28 = arith.constant 1 : index
    %c0_29 = arith.constant 0 : index
    %c0_30 = arith.constant 0 : index
    %32 = vector.load %arg1[%c1_28, %c0_29, %c0_30] : memref<3x128x128xbf16, #tpu.memory_space<vmem>>, vector<1x128x128xbf16>
    %33 = vector.shape_cast %32 : vector<1x128x128xbf16> to vector<128x128xbf16>
    %cst_31 = arith.constant dense<0.000000e+00> : vector<24x128xf32>
    %34 = tpu.matmul %31, %33, %cst_31 {dimension_numbers = #tpu.dot_dimension_numbers<[1], [0], [0], [1], [0, 0, 1, 1], [], []>} : vector<24x128xbf16>, vector<128x128xbf16>, vector<24x128xf32> -> vector<24x128xf32>
    %35 = arith.addf %28, %34 : vector<24x128xf32>
    %c0_32 = arith.constant 0 : index
    %c0_33 = arith.constant 0 : index
    %c0_34 = arith.constant 0 : index
    %36 = vector.load %arg4[%c0_32, %c0_33, %c0_34] : memref<2x26x128xf32, #tpu.memory_space<vmem>>, vector<1x24x128xf32>
    %37 = vector.shape_cast %36 : vector<1x24x128xf32> to vector<24x128xf32>
    %38 = arith.truncf %37 : vector<24x128xf32> to vector<24x128xbf16>
    %c2_35 = arith.constant 2 : index
    %c0_36 = arith.constant 0 : index
    %c0_37 = arith.constant 0 : index
    %39 = vector.load %arg1[%c2_35, %c0_36, %c0_37] : memref<3x128x128xbf16, #tpu.memory_space<vmem>>, vector<1x128x128xbf16>
    %40 = vector.shape_cast %39 : vector<1x128x128xbf16> to vector<128x128xbf16>
    %cst_38 = arith.constant dense<0.000000e+00> : vector<24x128xf32>
    %41 = tpu.matmul %38, %40, %cst_38 {dimension_numbers = #tpu.dot_dimension_numbers<[1], [0], [0], [1], [0, 0, 1, 1], [], []>} : vector<24x128xbf16>, vector<128x128xbf16>, vector<24x128xf32> -> vector<24x128xf32>
    %42 = arith.addf %35, %41 : vector<24x128xf32>
    %cst_39 = arith.constant 2.000000e+01 : f32
    %43 = vector.broadcast %cst_39 : f32 to vector<24x128xf32>
    %44 = arith.minimumf %42, %43 : vector<24x128xf32>
    %45 = math.exp %44 : vector<24x128xf32>
    %cst_40 = arith.constant 1.000000e+00 : f32
    %46 = vector.broadcast %cst_40 : f32 to vector<24x128xf32>
    %47 = arith.addf %46, %45 : vector<24x128xf32>
    %48 = arith.mulf %47, %47 : vector<24x128xf32>
    %cst_41 = arith.constant 1.000000e+00 : f32
    %49 = vector.broadcast %cst_41 : f32 to vector<24x128xf32>
    %50 = arith.addf %48, %49 : vector<24x128xf32>
    %51 = tpu.reciprocal %50 {approx = true} : vector<24x128xf32> -> vector<24x128xf32>
    %52 = arith.mulf %50, %51 : vector<24x128xf32>
    %cst_42 = arith.constant 2.000000e+00 : f32
    %53 = vector.broadcast %cst_42 : f32 to vector<24x128xf32>
    %54 = arith.subf %53, %52 : vector<24x128xf32>
    %55 = arith.mulf %51, %54 : vector<24x128xf32>
    %cst_43 = arith.constant 1.000000e+00 : f32
    %56 = vector.broadcast %cst_43 : f32 to vector<24x128xf32>
    %57 = arith.subf %48, %56 : vector<24x128xf32>
    %58 = arith.mulf %42, %57 : vector<24x128xf32>
    %59 = arith.mulf %58, %55 : vector<24x128xf32>
    %c0_44 = arith.constant 0 : index
    %c0_45 = arith.constant 0 : index
    %c0_46 = arith.constant 0 : index
    %60 = vector.load %arg3[%c0_44, %c0_45, %c0_46] : memref<3x24x128xf32, #tpu.memory_space<vmem>>, vector<1x24x128xf32>
    %61 = vector.shape_cast %60 : vector<1x24x128xf32> to vector<24x128xf32>
    %62 = vector.shape_cast %59 : vector<24x128xf32> to vector<1x24x128xf32>
    tpu.vector_store %arg3[%c0_44, %c0_45, %c0_46], %62 {strides = array<i32>} : memref<3x24x128xf32, #tpu.memory_space<vmem>>, vector<1x24x128xf32>,
    %c1_47 = arith.constant 1 : index
    %c0_48 = arith.constant 0 : index
    %c0_49 = arith.constant 0 : index
    %63 = vector.load %arg2[%c1_47, %c0_48, %c0_49] : memref<3x16x128xf32, #tpu.memory_space<vmem>>, vector<1x16x128xf32>
    %64 = vector.shape_cast %63 : vector<1x16x128xf32> to vector<16x128xf32>
    %c1_50 = arith.constant 1 : index
    %c2_51 = arith.constant 2 : index
    %c0_52 = arith.constant 0 : index
    %65 = vector.load %arg4[%c1_50, %c2_51, %c0_52] : memref<2x26x128xf32, #tpu.memory_space<vmem>>, vector<1x16x128xf32>
    %66 = vector.shape_cast %65 : vector<1x16x128xf32> to vector<16x128xf32>
    %67 = vector.shape_cast %64 : vector<16x128xf32> to vector<1x16x128xf32>
    tpu.vector_store %arg4[%c1_50, %c2_51, %c0_52], %67 {strides = array<i32>} : memref<2x26x128xf32, #tpu.memory_space<vmem>>, vector<1x16x128xf32>,
    %cst_53 = arith.constant 0.000000e+00 : f32
    %68 = vector.broadcast %cst_53 : f32 to vector<24x128xf32>
    %c1_54 = arith.constant 1 : index
    %c2_55 = arith.constant 2 : index
    %c0_56 = arith.constant 0 : index
    %69 = vector.load %arg4[%c1_54, %c2_55, %c0_56] : memref<2x26x128xf32, #tpu.memory_space<vmem>>, vector<1x24x128xf32>
    %70 = vector.shape_cast %69 : vector<1x24x128xf32> to vector<24x128xf32>
    %71 = arith.truncf %70 : vector<24x128xf32> to vector<24x128xbf16>
    %c0_57 = arith.constant 0 : index
    %c0_58 = arith.constant 0 : index
    %c0_59 = arith.constant 0 : index
    %72 = vector.load %arg1[%c0_57, %c0_58, %c0_59] : memref<3x128x128xbf16, #tpu.memory_space<vmem>>, vector<1x128x128xbf16>
    %73 = vector.shape_cast %72 : vector<1x128x128xbf16> to vector<128x128xbf16>
    %cst_60 = arith.constant dense<0.000000e+00> : vector<24x128xf32>
    %74 = tpu.matmul %71, %73, %cst_60 {dimension_numbers = #tpu.dot_dimension_numbers<[1], [0], [0], [1], [0, 0, 1, 1], [], []>} : vector<24x128xbf16>, vector<128x128xbf16>, vector<24x128xf32> -> vector<24x128xf32>
    %75 = arith.addf %68, %74 : vector<24x128xf32>
    %c1_61 = arith.constant 1 : index
    %c1_62 = arith.constant 1 : index
    %c0_63 = arith.constant 0 : index
    %76 = vector.load %arg4[%c1_61, %c1_62, %c0_63] : memref<2x26x128xf32, #tpu.memory_space<vmem>>, vector<1x24x128xf32>
    %77 = vector.shape_cast %76 : vector<1x24x128xf32> to vector<24x128xf32>
    %78 = arith.truncf %77 : vector<24x128xf32> to vector<24x128xbf16>
    %c1_64 = arith.constant 1 : index
    %c0_65 = arith.constant 0 : index
    %c0_66 = arith.constant 0 : index
    %79 = vector.load %arg1[%c1_64, %c0_65, %c0_66] : memref<3x128x128xbf16, #tpu.memory_space<vmem>>, vector<1x128x128xbf16>
    %80 = vector.shape_cast %79 : vector<1x128x128xbf16> to vector<128x128xbf16>
    %cst_67 = arith.constant dense<0.000000e+00> : vector<24x128xf32>
    %81 = tpu.matmul %78, %80, %cst_67 {dimension_numbers = #tpu.dot_dimension_numbers<[1], [0], [0], [1], [0, 0, 1, 1], [], []>} : vector<24x128xbf16>, vector<128x128xbf16>, vector<24x128xf32> -> vector<24x128xf32>
    %82 = arith.addf %75, %81 : vector<24x128xf32>
    %c1_68 = arith.constant 1 : index
    %c0_69 = arith.constant 0 : index
    %c0_70 = arith.constant 0 : index
    %83 = vector.load %arg4[%c1_68, %c0_69, %c0_70] : memref<2x26x128xf32, #tpu.memory_space<vmem>>, vector<1x24x128xf32>
    %84 = vector.shape_cast %83 : vector<1x24x128xf32> to vector<24x128xf32>
    %85 = arith.truncf %84 : vector<24x128xf32> to vector<24x128xbf16>
    %c2_71 = arith.constant 2 : index
    %c0_72 = arith.constant 0 : index
    %c0_73 = arith.constant 0 : index
    %86 = vector.load %arg1[%c2_71, %c0_72, %c0_73] : memref<3x128x128xbf16, #tpu.memory_space<vmem>>, vector<1x128x128xbf16>
    %87 = vector.shape_cast %86 : vector<1x128x128xbf16> to vector<128x128xbf16>
    %cst_74 = arith.constant dense<0.000000e+00> : vector<24x128xf32>
    %88 = tpu.matmul %85, %87, %cst_74 {dimension_numbers = #tpu.dot_dimension_numbers<[1], [0], [0], [1], [0, 0, 1, 1], [], []>} : vector<24x128xbf16>, vector<128x128xbf16>, vector<24x128xf32> -> vector<24x128xf32>
    %89 = arith.addf %82, %88 : vector<24x128xf32>
    %cst_75 = arith.constant 2.000000e+01 : f32
    %90 = vector.broadcast %cst_75 : f32 to vector<24x128xf32>
    %91 = arith.minimumf %89, %90 : vector<24x128xf32>
    %92 = math.exp %91 : vector<24x128xf32>
    %cst_76 = arith.constant 1.000000e+00 : f32
    %93 = vector.broadcast %cst_76 : f32 to vector<24x128xf32>
    %94 = arith.addf %93, %92 : vector<24x128xf32>
    %95 = arith.mulf %94, %94 : vector<24x128xf32>
    %cst_77 = arith.constant 1.000000e+00 : f32
    %96 = vector.broadcast %cst_77 : f32 to vector<24x128xf32>
    %97 = arith.addf %95, %96 : vector<24x128xf32>
    %98 = tpu.reciprocal %97 {approx = true} : vector<24x128xf32> -> vector<24x128xf32>
    %99 = arith.mulf %97, %98 : vector<24x128xf32>
    %cst_78 = arith.constant 2.000000e+00 : f32
    %100 = vector.broadcast %cst_78 : f32 to vector<24x128xf32>
    %101 = arith.subf %100, %99 : vector<24x128xf32>
    %102 = arith.mulf %98, %101 : vector<24x128xf32>
    %cst_79 = arith.constant 1.000000e+00 : f32
    %103 = vector.broadcast %cst_79 : f32 to vector<24x128xf32>
    %104 = arith.subf %95, %103 : vector<24x128xf32>
    %105 = arith.mulf %89, %104 : vector<24x128xf32>
    %106 = arith.mulf %105, %102 : vector<24x128xf32>
    %c1_80 = arith.constant 1 : index
    %c0_81 = arith.constant 0 : index
    %c0_82 = arith.constant 0 : index
    %107 = vector.load %arg3[%c1_80, %c0_81, %c0_82] : memref<3x24x128xf32, #tpu.memory_space<vmem>>, vector<1x24x128xf32>
    %108 = vector.shape_cast %107 : vector<1x24x128xf32> to vector<24x128xf32>
    %109 = vector.shape_cast %106 : vector<24x128xf32> to vector<1x24x128xf32>
    tpu.vector_store %arg3[%c1_80, %c0_81, %c0_82], %109 {strides = array<i32>} : memref<3x24x128xf32, #tpu.memory_space<vmem>>, vector<1x24x128xf32>,
    %c2_83 = arith.constant 2 : index
    %c0_84 = arith.constant 0 : index
    %c0_85 = arith.constant 0 : index
    %110 = vector.load %arg2[%c2_83, %c0_84, %c0_85] : memref<3x16x128xf32, #tpu.memory_space<vmem>>, vector<1x16x128xf32>
    %111 = vector.shape_cast %110 : vector<1x16x128xf32> to vector<16x128xf32>
    %c0_86 = arith.constant 0 : index
    %c2_87 = arith.constant 2 : index
    %c0_88 = arith.constant 0 : index
    %112 = vector.load %arg4[%c0_86, %c2_87, %c0_88] : memref<2x26x128xf32, #tpu.memory_space<vmem>>, vector<1x16x128xf32>
    %113 = vector.shape_cast %112 : vector<1x16x128xf32> to vector<16x128xf32>
    %114 = vector.shape_cast %111 : vector<16x128xf32> to vector<1x16x128xf32>
    tpu.vector_store %arg4[%c0_86, %c2_87, %c0_88], %114 {strides = array<i32>} : memref<2x26x128xf32, #tpu.memory_space<vmem>>, vector<1x16x128xf32>,
    %cst_89 = arith.constant 0.000000e+00 : f32
    %115 = vector.broadcast %cst_89 : f32 to vector<24x128xf32>
    %c0_90 = arith.constant 0 : index
    %c2_91 = arith.constant 2 : index
    %c0_92 = arith.constant 0 : index
    %116 = vector.load %arg4[%c0_90, %c2_91, %c0_92] : memref<2x26x128xf32, #tpu.memory_space<vmem>>, vector<1x24x128xf32>
    %117 = vector.shape_cast %116 : vector<1x24x128xf32> to vector<24x128xf32>
    %118 = arith.truncf %117 : vector<24x128xf32> to vector<24x128xbf16>
    %c0_93 = arith.constant 0 : index
    %c0_94 = arith.constant 0 : index
    %c0_95 = arith.constant 0 : index
    %119 = vector.load %arg1[%c0_93, %c0_94, %c0_95] : memref<3x128x128xbf16, #tpu.memory_space<vmem>>, vector<1x128x128xbf16>
    %120 = vector.shape_cast %119 : vector<1x128x128xbf16> to vector<128x128xbf16>
    %cst_96 = arith.constant dense<0.000000e+00> : vector<24x128xf32>
    %121 = tpu.matmul %118, %120, %cst_96 {dimension_numbers = #tpu.dot_dimension_numbers<[1], [0], [0], [1], [0, 0, 1, 1], [], []>} : vector<24x128xbf16>, vector<128x128xbf16>, vector<24x128xf32> -> vector<24x128xf32>
    %122 = arith.addf %115, %121 : vector<24x128xf32>
    %c0_97 = arith.constant 0 : index
    %c1_98 = arith.constant 1 : index
    %c0_99 = arith.constant 0 : index
    %123 = vector.load %arg4[%c0_97, %c1_98, %c0_99] : memref<2x26x128xf32, #tpu.memory_space<vmem>>, vector<1x24x128xf32>
    %124 = vector.shape_cast %123 : vector<1x24x128xf32> to vector<24x128xf32>
    %125 = arith.truncf %124 : vector<24x128xf32> to vector<24x128xbf16>
    %c1_100 = arith.constant 1 : index
    %c0_101 = arith.constant 0 : index
    %c0_102 = arith.constant 0 : index
    %126 = vector.load %arg1[%c1_100, %c0_101, %c0_102] : memref<3x128x128xbf16, #tpu.memory_space<vmem>>, vector<1x128x128xbf16>
    %127 = vector.shape_cast %126 : vector<1x128x128xbf16> to vector<128x128xbf16>
    %cst_103 = arith.constant dense<0.000000e+00> : vector<24x128xf32>
    %128 = tpu.matmul %125, %127, %cst_103 {dimension_numbers = #tpu.dot_dimension_numbers<[1], [0], [0], [1], [0, 0, 1, 1], [], []>} : vector<24x128xbf16>, vector<128x128xbf16>, vector<24x128xf32> -> vector<24x128xf32>
    %129 = arith.addf %122, %128 : vector<24x128xf32>
    %c0_104 = arith.constant 0 : index
    %c0_105 = arith.constant 0 : index
    %c0_106 = arith.constant 0 : index
    %130 = vector.load %arg4[%c0_104, %c0_105, %c0_106] : memref<2x26x128xf32, #tpu.memory_space<vmem>>, vector<1x24x128xf32>
    %131 = vector.shape_cast %130 : vector<1x24x128xf32> to vector<24x128xf32>
    %132 = arith.truncf %131 : vector<24x128xf32> to vector<24x128xbf16>
    %c2_107 = arith.constant 2 : index
    %c0_108 = arith.constant 0 : index
    %c0_109 = arith.constant 0 : index
    %133 = vector.load %arg1[%c2_107, %c0_108, %c0_109] : memref<3x128x128xbf16, #tpu.memory_space<vmem>>, vector<1x128x128xbf16>
    %134 = vector.shape_cast %133 : vector<1x128x128xbf16> to vector<128x128xbf16>
    %cst_110 = arith.constant dense<0.000000e+00> : vector<24x128xf32>
    %135 = tpu.matmul %132, %134, %cst_110 {dimension_numbers = #tpu.dot_dimension_numbers<[1], [0], [0], [1], [0, 0, 1, 1], [], []>} : vector<24x128xbf16>, vector<128x128xbf16>, vector<24x128xf32> -> vector<24x128xf32>
    %136 = arith.addf %129, %135 : vector<24x128xf32>
    %cst_111 = arith.constant 2.000000e+01 : f32
    %137 = vector.broadcast %cst_111 : f32 to vector<24x128xf32>
    %138 = arith.minimumf %136, %137 : vector<24x128xf32>
    %139 = math.exp %138 : vector<24x128xf32>
    %cst_112 = arith.constant 1.000000e+00 : f32
    %140 = vector.broadcast %cst_112 : f32 to vector<24x128xf32>
    %141 = arith.addf %140, %139 : vector<24x128xf32>
    %142 = arith.mulf %141, %141 : vector<24x128xf32>
    %cst_113 = arith.constant 1.000000e+00 : f32
    %143 = vector.broadcast %cst_113 : f32 to vector<24x128xf32>
    %144 = arith.addf %142, %143 : vector<24x128xf32>
    %145 = tpu.reciprocal %144 {approx = true} : vector<24x128xf32> -> vector<24x128xf32>
    %146 = arith.mulf %144, %145 : vector<24x128xf32>
    %cst_114 = arith.constant 2.000000e+00 : f32
    %147 = vector.broadcast %cst_114 : f32 to vector<24x128xf32>
    %148 = arith.subf %147, %146 : vector<24x128xf32>
    %149 = arith.mulf %145, %148 : vector<24x128xf32>
    %cst_115 = arith.constant 1.000000e+00 : f32
    %150 = vector.broadcast %cst_115 : f32 to vector<24x128xf32>
    %151 = arith.subf %142, %150 : vector<24x128xf32>
    %152 = arith.mulf %136, %151 : vector<24x128xf32>
    %153 = arith.mulf %152, %149 : vector<24x128xf32>
    %c2_116 = arith.constant 2 : index
    %c0_117 = arith.constant 0 : index
    %c0_118 = arith.constant 0 : index
    %154 = vector.load %arg3[%c2_116, %c0_117, %c0_118] : memref<3x24x128xf32, #tpu.memory_space<vmem>>, vector<1x24x128xf32>
    %155 = vector.shape_cast %154 : vector<1x24x128xf32> to vector<24x128xf32>
    %156 = vector.shape_cast %153 : vector<24x128xf32> to vector<1x24x128xf32>
    tpu.vector_store %arg3[%c2_116, %c0_117, %c0_118], %156 {strides = array<i32>} : memref<3x24x128xf32, #tpu.memory_space<vmem>>, vector<1x24x128xf32>,
    return
  }
  func.func @transform_0(%arg0: i32) -> (i32, i32, i32) {
    %c0_i32 = arith.constant 0 : i32
    %c0_i32_0 = arith.constant 0 : i32
    %c0_i32_1 = arith.constant 0 : i32
    %c0_i32_2 = arith.constant 0 : i32
    return %c0_i32, %c0_i32_0, %c0_i32_1 : i32, i32, i32
  }
  func.func @transform_1(%arg0: i32) -> (i32, i32, i32) {
    %c0_i32 = arith.constant 0 : i32
    %c0_i32_0 = arith.constant 0 : i32
    %c0_i32_1 = arith.constant 0 : i32
    return %arg0, %c0_i32, %c0_i32_0 : i32, i32, i32
  }
  func.func @transform_2(%arg0: i32) -> (i32, i32, i32) {
    %c0_i32 = arith.constant 0 : i32
    %c0_i32_0 = arith.constant 0 : i32
    %c0_i32_1 = arith.constant 0 : i32
    return %arg0, %c0_i32, %c0_i32_0 : i32, i32, i32
  }
}

</mosaic_0001>

<bundles_post_ra>
// kernel: conv_layer_pallas.1
= control target key start
LH: loop header
LB: loop body
LE: loop exit
PB: predicated region body
PF: predicated region fallthrough
CT: control target
= control target key end

     0   :  { %7 = vsyncpa [#allocation4], 0  ;;  %s2538_s0 = inlined_call_operand.vmem [shape: bf16[3,128,128], index: 0, kind: input, shape index: {}]   ;;  %s2539_s1 = inlined_call_operand.vmem [shape: f32[6,16,128], index: 1, kind: input, shape index: {}]   ;;  %s2540_s2 = inlined_call_operand.hbm [shape: f32[6,24,128], index: 2, kind: output, shape index: {}]  }
   0x1   :  { %9 = vsyncpa [#allocation4 + $0x1], 0  ;;  %s2164_s9 = smov 0   ;;  %s2166_s10 = smov 0  }
   0x2   :  { %s2168_s11 = smov 0   ;;  %s2170_s12 = smov 0  }
   0x3 LB: > { %s2185_s13 = sadd.s32 4294967295, %s2142_s12   ;;  %s1437_s14 = sadd.s32 4294967294, %s2142_s12   ;;  %s2142_s12 = sphi %s2170_s12, %s2547_s12   ;;  %s2138_s11 = sphi %s2168_s11, %s2546_s11   ;;  %s2134_s10 = sphi %s2166_s10, %s2545_s10   ;;  %s2130_s9 = sphi %s2164_s9, %s2544_s9  }
   0x4   : > { %s2189_s15 = sadd.s32 1, %s2142_s12   ;;  %s69_s16 = sadd.s32 1, %s2138_s11 }
   0x5   : > { %s66_s17 = ssub.s32 %s2142_s12, %s2189_s15  ;;  %p79_p0 = scmp.ne.s32.totalorder %s2138_s11, %s2134_s10 }
   0x6   : > { %p67_p1 = scmp.eq.s32.totalorder %s66_s17, 0  ;;  %p80_p2 = scmp.eq.s32.totalorder %s2185_s13, 1 }
   0x7   : > { %p85_p3 = scmp.ne.s32.totalorder %s2134_s10, %s2130_s9  ;;  %p86_p4 = scmp.eq.s32.totalorder %s1437_s14, 1 }
   0x8   : > { %s2200_s18 = scalar_select %p67_p1, %s2138_s11, %s69_s16  }
   0x9   : > { %p2202_p5 = por %p80_p2, %p79_p0  ;;  %p2206_p6 = por %p86_p4, %p85_p3 }
   0xa   : > { %p1440_p7 = scmp.ge.s32.totalorder %s2142_s12, 1  ;;  %p117_p8 = scmp.lt.s32.totalorder %s2142_s12, 3 }
   0xc   : > { %p118_p9 = pnand %p1440_p7, %p117_p8 }
   0xd   : > { %v1972_v0 = vld [vmem:[%s2538_s0 + $0x40] sm:$0xff] (!%p118_p9)   ;;  %s140_s23 = smul.u32 (!%p118_p9), 3, %s2185_s13  ;;  %v1974_v2 = vld [vmem:[%s2538_s0 + $0x48] sm:$0xff] (!%p118_p9)   ;;  %v2144_v3 = vmov (!%p118_p9), 0.0   ;;  %v1976_v5 = vld [vmem:[%s2538_s0 + $0x50] sm:$0xff] (!%p118_p9)   ;;  %v2145_v33 = vmov (!%p118_p9), 0.0|0.0  }
   0xe   : > { %121 = sbr.rel (%p118_p9) target bundleno = 445 (0x1bd), region = 28  ;;  %v1973_v1 = vld [vmem:[%s2538_s0] sm:$0xff] (!%p118_p9)   ;;  %1724 = vmatprep.subr.bf16.mxu1 (!%p118_p9), %v1972_v0  ;;  %149 = vst [vmem:[#allocation2] sm:$0x3] (!%p118_p9), %v2144_v3  ;;  %150 = vst [vmem:[#allocation2 + $0x12] sm:$0xff] (!%p118_p9), %v2144_v3  ;;  %v1975_v4 = vld [vmem:[%s2538_s0 + $0x8] sm:$0xff] (!%p118_p9)  }
   0xf   : > { %p2222_p10 = scmp.lt.s32.totalorder (!%p118_p9), %s140_s23, 5  ;;  %152 = vst [vmem:[#allocation2 + $0x20] sm:$0x3] (!%p118_p9), %v2144_v3  ;;  %153 = vst [vmem:[#allocation2 + $0x32] sm:$0xff] (!%p118_p9), %v2144_v3  ;;  %1744 = vmatprep.subr.bf16.mxu0 (!%p118_p9), %v1973_v1  ;;  %1725 = vmatpush3.bf16.msra.mxu1 (!%p118_p9), %v1972_v0  ;;  %v1977_v6 = vld [vmem:[%s2538_s0 + $0x10] sm:$0xff] (!%p118_p9)   ;;  %v1978_v7 = vld [vmem:[%s2538_s0 + $0x58] sm:$0xff] (!%p118_p9)  }
  0x10   : > { %1745 = vmatpush3.bf16.msra.mxu0 (!%p118_p9), %v1973_v1  ;;  %1726 = vmatprep.subr.bf16.mxu1 (!%p118_p9), %v1974_v2  ;;  %v1979_v8 = vld [vmem:[%s2538_s0 + $0x18] sm:$0xff] (!%p118_p9)   ;;  %v1980_v9 = vld [vmem:[%s2538_s0 + $0x60] sm:$0xff] (!%p118_p9)   ;;  %v1982_v11 = vld [vmem:[%s2538_s0 + $0x68] sm:$0xff] (!%p118_p9)   ;;  %s137_s16 = sand.u32 (!%p118_p9), 1, %s2134_s10   ;;  %s1935_s22 = smul.u32 (!%p118_p9), 1152, %s2185_s13 }
  0x11   : > { %1746 = vmatprep.subr.bf16.mxu0 (!%p118_p9), %v1975_v4  ;;  %v1981_v10 = vld [vmem:[%s2538_s0 + $0x20] sm:$0xff] (!%p118_p9)   ;;  %v1983_v14 = vld [vmem:[%s2538_s0 + $0x28] sm:$0xff] (!%p118_p9)   ;;  %v1984_v16 = vld [vmem:[%s2538_s0 + $0x70] sm:$0xff] (!%p118_p9)   ;;  %s2497_s13 = scalar_lea.sflag (!%p118_p9), [#allocation4], %s137_s16  ;;  %s2146_s29 = smov (!%p118_p9), [#allocation3]  }
  0x12   : > { %v1985_v17 = vld [vmem:[%s2538_s0 + $0x30] sm:$0xff] (!%p118_p9)   ;;  %v1986_v18 = vld [vmem:[%s2538_s0 + $0x78] sm:$0xff] (!%p118_p9)   ;;  %v1989_v24 = vld [vmem:[%s2538_s0 + $0x40] sm:$0xff] (!%p118_p9)   ;;  %s2489_s27 = scalar_lea.hbm (!%p118_p9), %s2540_s2, %s1935_s22  ;;  %s2084_s30 = sshll.u32 (!%p118_p9), %s2146_s29, 4  ;;  %s2085_s30 = int_to_ptr.vmem [resolvable:$false] %s2084_s30 }
  0x13   : > { %1727 = vmatpush3.bf16.msra.mxu1 (!%p118_p9), %v1974_v2  ;;  %v1987_v21 = vld [vmem:[%s2538_s0 + $0x38] sm:$0xff] (!%p118_p9)   ;;  %v1988_v25 = vld [vmem:[%s2538_s0 + $0x80] sm:$0xff] (!%p118_p9)   ;;  %v1991_v27 = vld [vmem:[%s2538_s0 + $0x48] sm:$0xff] (!%p118_p9)   ;;  %s2086_s3 = scalar_lea.vmem (!%p118_p9), %s2085_s30, 2304 }
  0x14   : > { %1747 = vmatpush3.bf16.msra.mxu0 (!%p118_p9), %v1975_v4  ;;  %1728 = vmatprep.subr.bf16.mxu1 (!%p118_p9), %v1976_v5  ;;  %v1990_v28 = vld [vmem:[%s2538_s0 + $0x88] sm:$0xff] (!%p118_p9)   ;;  %v1993_v38 = vld [vmem:[%s2538_s0 + $0x50] sm:$0xff] (!%p118_p9)   ;;  %v1995_v41 = vld [vmem:[%s2538_s0 + $0x58] sm:$0xff] (!%p118_p9)  }
  0x15   : > { %s2549_s23 = smov (!%p2222_p10, %s140_s23), 5  ;;  %1748 = vmatprep.subr.bf16.mxu0 %v1977_v6  ;;  %v1992_v40 = vld [vmem:[%s2538_s0 + $0x90] sm:$0xff]   ;;  %v1994_v42 = vld [vmem:[%s2538_s0 + $0x98] sm:$0xff]   ;;  %v1997_v45 = vld [vmem:[%s2538_s0 + $0x60] sm:$0xff]  }
  0x16   : > { %s1633_s17 = sshll.u32 %s2549_s23, 4  ;;  %v1996_v47 = vld [vmem:[%s2538_s0 + $0xa0] sm:$0xff]   ;;  %v1999_v48 = vld [vmem:[%s2538_s0 + $0x68] sm:$0xff]   ;;  %v2001_v50 = vld [vmem:[%s2538_s0 + $0x70] sm:$0xff]  }
  0x17   : > { %1729 = vmatpush3.bf16.msra.mxu1 %v1976_v5  ;;  %s2252_s28 = scalar_lea.vmem %s2539_s1, %s1633_s17  ;;  %v1998_v49 = vld [vmem:[%s2538_s0 + $0xa8] sm:$0xff]   ;;  %v2000_v51 = vld [vmem:[%s2538_s0 + $0xb0] sm:$0xff]   ;;  %v2003_v52 = vld [vmem:[%s2538_s0 + $0x78] sm:$0xff]   ;;  %s1927_s17 = smul.u32 72, %s137_s16 }
  0x18   : > { %1749 = vmatpush3.bf16.msra.mxu0 %v1977_v6  ;;  %1730 = vmatprep.subr.bf16.mxu1 %v1978_v7  ;;  %v154_v12 = vld [vmem:[%s2252_s28] sm:$0xff]  ;;  %v155_v13 = vld [vmem:[%s2252_s28 + $0x8] sm:$0xff]  ;;  %v2297_v36 = vld [vmem:[%s2252_s28 + $0x10] sm:$0xff] }
  0x19   : > { %1750 = vmatprep.subr.bf16.mxu0 %v1979_v8  ;;  %156 = vst [vmem:[#allocation2 + $0x2] sm:$0xff] %v154_v12  ;;  %157 = vst [vmem:[#allocation2 + $0xa] sm:$0xff] %v155_v13  ;;  %v161_v15 = vpack.c.bf16 %v155_v13, %v154_v12  ;;  %v2287_v31 = vld [vmem:[%s2252_s28 + $0x20] sm:$0xff]  ;;  %v2294_v35 = vld [vmem:[%s2252_s28 + $0x28] sm:$0xff]  ;;  %s2475_s21 = scalar_lea.vmem [#allocation3], %s1927_s17 }
  0x1a   : > { %v2300_v37 = vld [vmem:[%s2252_s28 + $0x18] sm:$0xff]  ;;  %559 = vst [vmem:[#allocation2 + $0x22] sm:$0xff] %v2297_v36  ;;  %v966_v39 = vpack.c.bf16 %v2294_v35, %v2287_v31  ;;  %v2004_v55 = vld [vmem:[%s2538_s0] sm:$0xff]   ;;  %v2006_v61 = vld [vmem:[%s2538_s0 + $0x8] sm:$0xff]   ;;  %s1375_s24 = sshll.u32 %s2475_s21, 4  ;;  %s2491_s24 = int_to_ptr.vmem [resolvable:$true] %s1375_s24 }
  0x1b   : > { %1731 = vmatpush3.bf16.msra.mxu1 %v1978_v7  ;;  %1760 = vmatprep.mubr.bf16.mxu0 %v161_v15  ;;  %560 = vst [vmem:[#allocation2 + $0x2a] sm:$0xff] %v2300_v37  ;;  %v2002_v53 = vld [vmem:[%s2538_s0 + $0xb8] sm:$0xff]   ;;  %v2005_v56 = vld [vmem:[%s2538_s0 + $0x40] sm:$0xff]   ;;  %v2007_v62 = vld [vmem:[%s2538_s0 + $0x48] sm:$0xff]   ;;  %v564_v63 = vpack.c.bf16 %v2300_v37, %v2297_v36  ;;  %s2080_s23 = scalar_lea.vmem %s2491_s24, 1152  ;;  %p2087_p0 = scmp.lt.s32.totalorder %s2491_s24, %s2085_s30 }
  0x1c   : > { %1751 = vmatpush3.bf16.msra.mxu0 %v1979_v8  ;;  %1732 = vmatprep.subr.bf16.mxu1 %v1980_v9  ;;  %v2008_v1 = vld [vmem:[%s2538_s0 + $0x10] sm:$0xff]   ;;  %v2010_v3 = vld [vmem:[%s2538_s0 + $0x18] sm:$0xff]   ;;  %v2012_v5 = vld [vmem:[%s2538_s0 + $0x20] sm:$0xff]   ;;  %p2081_p11 = scmp.ne.s32.totalorder %s2491_s24, %s2080_s23  ;;  %p2088_p1 = scmp.lt.s32.totalorder %s2086_s3, %s2080_s23 }
  0x1d   : > { %1752 = vmatprep.subr.bf16.mxu0 %v1981_v10  ;;  %v2009_v2 = vld [vmem:[%s2538_s0 + $0x50] sm:$0xff]   ;;  %v2011_v4 = vld [vmem:[%s2538_s0 + $0x58] sm:$0xff]   ;;  %v2013_v6 = vld [vmem:[%s2538_s0 + $0x60] sm:$0xff]  }
  0x1e   : > { %v2014_v7 = vld [vmem:[%s2538_s0 + $0x28] sm:$0xff]   ;;  %v2019_v12 = vld [vmem:[%s2538_s0 + $0x78] sm:$0xff]   ;;  %v2020_v13 = vld [vmem:[%s2538_s0 + $0x80] sm:$0xff]   ;;  %p2082_p12 = pnand %p2081_p11, %p2202_p5  ;;  %p2089_p2 = por %p2088_p1, %p2087_p0 }
  0x1f   : > { %1733 = vmatpush3.bf16.msra.mxu1 %v1980_v9  ;;  %v2015_v8 = vld [vmem:[%s2538_s0 + $0x68] sm:$0xff]   ;;  %v2016_v9 = vld [vmem:[%s2538_s0 + $0x30] sm:$0xff]   ;;  %v2021_v15 = vld [vmem:[%s2538_s0] sm:$0xff]  }
  0x20   : > { %1753 = vmatpush3.bf16.msra.mxu0 %v1981_v10  ;;  %1734 = vmatprep.subr.bf16.mxu1 %v1982_v11  ;;  %v179_v19 = vld [vmem:[#allocation2 + $0x1] sm:$0xff]  ;;  %v180_v20 = vld [vmem:[#allocation2 + $0x9] sm:$0xff]  ;;  %v181_v23 = vld [vmem:[#allocation2 + $0x11] sm:$0xff]  ;;  %p2083_p13 = pneg %p2082_p12 }
  0x21   : > { %1754 = vmatprep.subr.bf16.mxu0 %v1983_v14  ;;  %v182_v22 = vpack.c.bf16 %v180_v20, %v179_v19  ;;  %v183_v26 = vpack.c.bf16 %v181_v23, %v181_v23  ;;  %v393_v29 = vld [vmem:[#allocation2] sm:$0xff]  ;;  %v394_v30 = vld [vmem:[#allocation2 + $0x8] sm:$0xff]  ;;  %v2289_v32 = vld [vmem:[#allocation2 + $0x10] sm:$0xff] }
  0x22   : > { %v396_v34 = vpack.c.bf16 %v394_v30, %v393_v29  ;;  %961 = vst [vmem:[#allocation2 + $0x2] sm:$0xff] %v2287_v31  ;;  %962 = vst [vmem:[#allocation2 + $0xa] sm:$0xff] %v2294_v35  ;;  %v582_v43 = vld [vmem:[#allocation2 + $0x21] sm:$0xff]  ;;  %v583_v44 = vld [vmem:[#allocation2 + $0x29] sm:$0xff]  ;;  %v397_v59 = vpack.c.bf16 %v2289_v32, %v2289_v32  ;;  %p2090_p3 = pnand %p2089_p2, %p2083_p13 }
  0x23   : > { %1735 = vmatpush3.bf16.msra.mxu1 %v1982_v11  ;;  %1740 = vmatprep.mubr.bf16.mxu1 %v182_v22  ;;  %v585_v46 = vpack.c.bf16 %v583_v44, %v582_v43  ;;  %v584_v54 = vld [vmem:[#allocation2 + $0x31] sm:$0xff]  ;;  %v2022_v19 = vld [vmem:[%s2538_s0 + $0x88] sm:$0xff]   ;;  %v2036_v36 = vld [vmem:[%s2538_s0 + $0x80] sm:$0xff]  }
  0x24   : > { %1755 = vmatpush3.bf16.msra.mxu0 %v1983_v14  ;;  %1736 = vmatprep.subr.bf16.mxu1 %v1984_v16  ;;  %v586_v57 = vpack.c.bf16 %v584_v54, %v584_v54  ;;  %v2017_v10 = vld [vmem:[%s2538_s0 + $0x70] sm:$0xff]   ;;  %v2018_v11 = vld [vmem:[%s2538_s0 + $0x38] sm:$0xff]   ;;  %v2023_v20 = vld [vmem:[%s2538_s0 + $0x8] sm:$0xff]  }
  0x25   : > { %1756 = vmatprep.subr.bf16.mxu0 %v1985_v17  ;;  %v2024_v22 = vld [vmem:[%s2538_s0 + $0x90] sm:$0xff]   ;;  %v2031_v29 = vld [vmem:[%s2538_s0 + $0x28] sm:$0xff]   ;;  %v2034_v32 = vld [vmem:[%s2538_s0 + $0xb8] sm:$0xff]  }
  0x26   : > { %v2025_v23 = vld [vmem:[%s2538_s0 + $0x10] sm:$0xff]   ;;  %v2039_v43 = vld [vmem:[%s2538_s0 + $0x98] sm:$0xff]   ;;  %v2040_v44 = vld [vmem:[%s2538_s0 + $0xa0] sm:$0xff]  }
  0x27   : > { %1737 = vmatpush3.bf16.msra.mxu1 %v1984_v16  ;;  %v795_v16 = vld [vmem:[#allocation2 + $0x20] sm:$0xff]  ;;  %v2032_v30 = vld [vmem:[%s2538_s0 + $0xb0] sm:$0xff]  }
  0x28   : > { %1757 = vmatpush3.bf16.msra.mxu0 %v1985_v17  ;;  %1738 = vmatprep.subr.bf16.mxu1 %v1986_v18  ;;  %v796_v17 = vld [vmem:[#allocation2 + $0x28] sm:$0xff]  ;;  %v2033_v31 = vld [vmem:[%s2538_s0 + $0x30] sm:$0xff]  }
  0x29   : > { %1758 = vmatprep.subr.bf16.mxu0 %v1987_v21  ;;  %v984_v58 = vld [vmem:[#allocation2 + $0x1] sm:$0xff]  ;;  %v985_v60 = vld [vmem:[#allocation2 + $0x9] sm:$0xff]  ;;  %v986_v14 = vld [vmem:[#allocation2 + $0x11] sm:$0xff] }
  0x2a   : > { %v987_v0 = vpack.c.bf16 %v985_v60, %v984_v58  ;;  %v797_v35 = vld [vmem:[#allocation2 + $0x30] sm:$0xff]  ;;  %v1197_v37 = vld [vmem:[#allocation2] sm:$0xff] }
  0x2b   : > { %1739 = vmatpush3.bf16.msra.mxu1 %v1986_v18  ;;  %v988_v18 = vpack.c.bf16 %v986_v14, %v986_v14 }
  0x2c   : > { %1759 = vmatpush3.bf16.msra.mxu0 %v1987_v21  ;;  %1784 = vmatprep.subr.bf16.mxu1 %v1989_v24  ;;  %v798_v21 = vpack.c.bf16 %v796_v17, %v795_v16 }
  0x2d   : > { %1764 = vmatprep.subr.bf16.mxu0 %v1988_v25 }
  0x2e   : > { %1741 = vmatmul.mubr.bf16.vlgmr.msra.gmra.mrb[0].mxu1 %v183_v26  ;;  %v2028_v26 = vld [vmem:[%s2538_s0 + $0xa0] sm:$0xff]  }
  0x2f   : > { %1761 = vmatmul.mubr.bf16.vlgmr.msra.gmra.mrb[0].mxu0 %v2145_v33  ;;  %1785 = vmatpush3.bf16.msra.mxu1 %v1989_v24  ;;  %v2026_v24 = vld [vmem:[%s2538_s0 + $0x98] sm:$0xff]  }
  0x30   : > { %1765 = vmatpush3.bf16.msra.mxu0 %v1988_v25  ;;  %1786 = vmatprep.subr.bf16.mxu1 %v1991_v27  ;;  %v2027_v25 = vld [vmem:[%s2538_s0 + $0x18] sm:$0xff]  }
  0x31   : > { %1766 = vmatprep.subr.bf16.mxu0 %v1990_v28  ;;  %1780 = vmatprep.mubr.bf16.mxu0 %v396_v34  ;;  %v2035_v34 = vld [vmem:[%s2538_s0 + $0x38] sm:$0xff]  }
  0x32   : > { %1800 = vmatprep.mubr.bf16.mxu1 %v585_v46  ;;  %v2043_v46 = vld [vmem:[%s2538_s0 + $0xb8] sm:$0xff]  }
  0x33   : > { %1787 = vmatpush3.bf16.msra.mxu1 %v1991_v27  ;;  %v2029_v27 = vld [vmem:[%s2538_s0 + $0x20] sm:$0xff]  }
  0x34   : > { %1767 = vmatpush3.bf16.msra.mxu0 %v1990_v28  ;;  %1788 = vmatprep.subr.bf16.mxu1 %v1993_v38  ;;  %v2030_v28 = vld [vmem:[%s2538_s0 + $0xa8] sm:$0xff]  }
  0x35   : > { %1768 = vmatprep.subr.bf16.mxu0 %v1992_v40 }
  0x37   : > { %1789 = vmatpush3.bf16.msra.mxu1 %v1993_v38  ;;  %v1198_v38 = vld [vmem:[#allocation2 + $0x8] sm:$0xff] }
  0x38   : > { %1769 = vmatpush3.bf16.msra.mxu0 %v1992_v40  ;;  %1790 = vmatprep.subr.bf16.mxu1 %v1995_v41  ;;  %v1200_v40 = vpack.c.bf16 %v1198_v38, %v1197_v37 }
  0x39   : > { %1770 = vmatprep.subr.bf16.mxu0 %v1994_v42 }
  0x3b   : > { %1791 = vmatpush3.bf16.msra.mxu1 %v1995_v41  ;;  %v2037_v41 = vld [vmem:[%s2538_s0 + $0x88] sm:$0xff]  }
  0x3c   : > { %1771 = vmatpush3.bf16.msra.mxu0 %v1994_v42  ;;  %1792 = vmatprep.subr.bf16.mxu1 %v1997_v45  ;;  %v2038_v42 = vld [vmem:[%s2538_s0 + $0x90] sm:$0xff]  }
  0x3d   : > { %1772 = vmatprep.subr.bf16.mxu0 %v1996_v47 }
  0x3f   : > { %1793 = vmatpush3.bf16.msra.mxu1 %v1997_v45  ;;  %v2042_v45 = vld [vmem:[%s2538_s0 + $0xb0] sm:$0xff]  }
  0x40   : > { %1773 = vmatpush3.bf16.msra.mxu0 %v1996_v47  ;;  %1794 = vmatprep.subr.bf16.mxu1 %v1999_v48  ;;  %v1199_v47 = vld [vmem:[#allocation2 + $0x10] sm:$0xff] }
  0x41   : > { %1774 = vmatprep.subr.bf16.mxu0 %v1998_v49 }
  0x43   : > { %1795 = vmatpush3.bf16.msra.mxu1 %v1999_v48  ;;  %v1201_v48 = vpack.c.bf16 %v1199_v47, %v1199_v47 }
  0x44   : > { %1775 = vmatpush3.bf16.msra.mxu0 %v1998_v49  ;;  %1796 = vmatprep.subr.bf16.mxu1 %v2001_v50 }
  0x45   : > { %1776 = vmatprep.subr.bf16.mxu0 %v2000_v51 }
  0x47   : > { %1797 = vmatpush3.bf16.msra.mxu1 %v2001_v50 }
  0x48   : > { %1777 = vmatpush3.bf16.msra.mxu0 %v2000_v51  ;;  %1798 = vmatprep.subr.bf16.mxu1 %v2003_v52 }
  0x49   : > { %1778 = vmatprep.subr.bf16.mxu0 %v2002_v53 }
  0x4b   : > { %1799 = vmatpush3.bf16.msra.mxu1 %v2003_v52 }
  0x4c   : > { %1779 = vmatpush3.bf16.msra.mxu0 %v2002_v53  ;;  %1804 = vmatprep.subr.bf16.mxu1 %v2004_v55 }
  0x4d   : > { %1844 = vmatprep.subr.bf16.mxu0 %v2005_v56 }
  0x4e   : > { %1801 = vmatmul.mubr.bf16.vlgmr.msra.gmra.mrb[4].mxu1 %v586_v57 }
  0x4f   : > { %1781 = vmatmul.mubr.bf16.vlgmr.msra.gmra.mrb[0].mxu0 %v397_v59  ;;  %1805 = vmatpush3.bf16.msra.mxu1 %v2004_v55 }
  0x50   : > { %1845 = vmatpush3.bf16.msra.mxu0 %v2005_v56  ;;  %1806 = vmatprep.subr.bf16.mxu1 %v2006_v61 }
  0x51   : > { %1846 = vmatprep.subr.bf16.mxu0 %v2007_v62  ;;  %1820 = vmatprep.mubr.bf16.mxu1 %v564_v63 }
  0x52   : > { %1860 = vmatprep.mubr.bf16.mxu0 %v987_v0 }
  0x53   : > { %1807 = vmatpush3.bf16.msra.mxu1 %v2006_v61 }
  0x54   : > { %1847 = vmatpush3.bf16.msra.mxu0 %v2007_v62  ;;  %1808 = vmatprep.subr.bf16.mxu1 %v2008_v1 }
  0x55   : > { %1848 = vmatprep.subr.bf16.mxu0 %v2009_v2 }
  0x57   : > { %1809 = vmatpush3.bf16.msra.mxu1 %v2008_v1 }
  0x58   : > { %1849 = vmatpush3.bf16.msra.mxu0 %v2009_v2  ;;  %1810 = vmatprep.subr.bf16.mxu1 %v2010_v3 }
  0x59   : > { %1850 = vmatprep.subr.bf16.mxu0 %v2011_v4 }
  0x5b   : > { %1811 = vmatpush3.bf16.msra.mxu1 %v2010_v3 }
  0x5c   : > { %1851 = vmatpush3.bf16.msra.mxu0 %v2011_v4  ;;  %1812 = vmatprep.subr.bf16.mxu1 %v2012_v5 }
  0x5d   : > { %1852 = vmatprep.subr.bf16.mxu0 %v2013_v6 }
  0x5f   : > { %1813 = vmatpush3.bf16.msra.mxu1 %v2012_v5 }
  0x60   : > { %1853 = vmatpush3.bf16.msra.mxu0 %v2013_v6  ;;  %1814 = vmatprep.subr.bf16.mxu1 %v2014_v7 }
  0x61   : > { %1854 = vmatprep.subr.bf16.mxu0 %v2015_v8 }
  0x63   : > { %1815 = vmatpush3.bf16.msra.mxu1 %v2014_v7 }
  0x64   : > { %1855 = vmatpush3.bf16.msra.mxu0 %v2015_v8  ;;  %1816 = vmatprep.subr.bf16.mxu1 %v2016_v9 }
  0x65   : > { %1856 = vmatprep.subr.bf16.mxu0 %v2017_v10 }
  0x67   : > { %1817 = vmatpush3.bf16.msra.mxu1 %v2016_v9 }
  0x68   : > { %1857 = vmatpush3.bf16.msra.mxu0 %v2017_v10  ;;  %1818 = vmatprep.subr.bf16.mxu1 %v2018_v11 }
  0x69   : > { %1858 = vmatprep.subr.bf16.mxu0 %v2019_v12 }
  0x6b   : > { %1819 = vmatpush3.bf16.msra.mxu1 %v2018_v11 }
  0x6c   : > { %1859 = vmatpush3.bf16.msra.mxu0 %v2019_v12  ;;  %1824 = vmatprep.subr.bf16.mxu1 %v2020_v13 }
  0x6d   : > { %1864 = vmatprep.subr.bf16.mxu0 %v2021_v15 }
  0x6e   : > { %1821 = vmatmul.mubr.bf16.vlgmr.msra.gmra.mrb[4].mxu1 %v2145_v33 }
  0x6f   : > { %1825 = vmatpush3.bf16.msra.mxu1 %v2020_v13  ;;  %1861 = vmatmul.mubr.bf16.vlgmr.msra.gmra.mrb[4].mxu0 %v988_v18 }
  0x70   : > { %1865 = vmatpush3.bf16.msra.mxu0 %v2021_v15  ;;  %1826 = vmatprep.subr.bf16.mxu1 %v2022_v19 }
  0x71   : > { %1866 = vmatprep.subr.bf16.mxu0 %v2023_v20  ;;  %1840 = vmatprep.mubr.bf16.mxu1 %v798_v21 }
  0x72   : > { %1880 = vmatprep.mubr.bf16.mxu0 %v966_v39  ;;  %v799_v39 = vpack.c.bf16 %v797_v35, %v797_v35 }
  0x73   : > { %1827 = vmatpush3.bf16.msra.mxu1 %v2022_v19 }
  0x74   : > { %1867 = vmatpush3.bf16.msra.mxu0 %v2023_v20  ;;  %1828 = vmatprep.subr.bf16.mxu1 %v2024_v22 }
  0x75   : > { %1868 = vmatprep.subr.bf16.mxu0 %v2025_v23 }
  0x77   : > { %1829 = vmatpush3.bf16.msra.mxu1 %v2024_v22 }
  0x78   : > { %1869 = vmatpush3.bf16.msra.mxu0 %v2025_v23  ;;  %1830 = vmatprep.subr.bf16.mxu1 %v2026_v24 }
  0x79   : > { %1870 = vmatprep.subr.bf16.mxu0 %v2027_v25 }
  0x7b   : > { %1831 = vmatpush3.bf16.msra.mxu1 %v2026_v24 }
  0x7c   : > { %1871 = vmatpush3.bf16.msra.mxu0 %v2027_v25  ;;  %1832 = vmatprep.subr.bf16.mxu1 %v2028_v26 }
  0x7d   : > { %1872 = vmatprep.subr.bf16.mxu0 %v2029_v27 }
  0x7f   : > { %1833 = vmatpush3.bf16.msra.mxu1 %v2028_v26 }
  0x80   : > { %1873 = vmatpush3.bf16.msra.mxu0 %v2029_v27  ;;  %1834 = vmatprep.subr.bf16.mxu1 %v2030_v28 }
  0x81   : > { %1874 = vmatprep.subr.bf16.mxu0 %v2031_v29 }
  0x83   : > { %1835 = vmatpush3.bf16.msra.mxu1 %v2030_v28 }
  0x84   : > { %1875 = vmatpush3.bf16.msra.mxu0 %v2031_v29  ;;  %1836 = vmatprep.subr.bf16.mxu1 %v2032_v30 }
  0x85   : > { %1876 = vmatprep.subr.bf16.mxu0 %v2033_v31 }
  0x87   : > { %1837 = vmatpush3.bf16.msra.mxu1 %v2032_v30 }
  0x88   : > { %1877 = vmatpush3.bf16.msra.mxu0 %v2033_v31  ;;  %1838 = vmatprep.subr.bf16.mxu1 %v2034_v32 }
  0x89   : > { %1878 = vmatprep.subr.bf16.mxu0 %v2035_v34 }
  0x8b   : > { %1839 = vmatpush3.bf16.msra.mxu1 %v2034_v32 }
  0x8c   : > { %1879 = vmatpush3.bf16.msra.mxu0 %v2035_v34 }
  0x8d   : > { %1884 = vmatprep.subr.bf16.mxu0 %v2036_v36 }
  0x8e   : > { %1841 = vmatmul.mubr.bf16.vlgmr.msra.gmra.mrb[4].mxu1 %v799_v39 }
  0x8f   : > { %1881 = vmatmul.mubr.bf16.vlgmr.msra.gmra.mrb[4].mxu0 %v2145_v33  ;;  %v2041_v33 = vld [vmem:[%s2538_s0 + $0xa8] sm:$0xff]  }
  0x90   : > { %1885 = vmatpush3.bf16.msra.mxu0 %v2036_v36  ;;  %1900 = vmatprep.mubr.bf16.mxu0 %v1200_v40 }
  0x91   : > { %1886 = vmatprep.subr.bf16.mxu0 %v2037_v41 }
  0x94   : > { %1887 = vmatpush3.bf16.msra.mxu0 %v2037_v41 }
  0x95   : > { %1888 = vmatprep.subr.bf16.mxu0 %v2038_v42 }
  0x98   : > { %1889 = vmatpush3.bf16.msra.mxu0 %v2038_v42 }
  0x99   : > { %1890 = vmatprep.subr.bf16.mxu0 %v2039_v43 }
  0x9c   : > { %1891 = vmatpush3.bf16.msra.mxu0 %v2039_v43 }
  0x9d   : > { %1892 = vmatprep.subr.bf16.mxu0 %v2040_v44 }
  0xa0   : > { %1893 = vmatpush3.bf16.msra.mxu0 %v2040_v44 }
  0xa1   : > { %1894 = vmatprep.subr.bf16.mxu0 %v2041_v33 }
  0xa4   : > { %1895 = vmatpush3.bf16.msra.mxu0 %v2041_v33 }
  0xa5   : > { %1896 = vmatprep.subr.bf16.mxu0 %v2042_v45 }
  0xa8   : > { %1897 = vmatpush3.bf16.msra.mxu0 %v2042_v45 }
  0xa9   : > { %1898 = vmatprep.subr.bf16.mxu0 %v2043_v46 }
  0xac   : > { %1899 = vmatpush3.bf16.msra.mxu0 %v2043_v46 }
  0xaf   : > { %1901 = vmatmul.mubr.bf16.vlgmr.msra.gmra.mrb[4].mxu0 %v1201_v48 }
 0x101   : > { %v1742_v49 = vpop.f32.mrb[0].mxu1 }
 0x102   : > { %v283_v50 = vpop.f32.mrb[1].mxu1 }
 0x103   : > { %v1743_v51 = vpop.f32.mrb[2].mxu1 }
 0x104   : > { %v286_v52 = vpop.f32.mrb[3].mxu1 }
 0x122   : > { %v1782_v53 = vpop.f32.mrb[0].mxu0 }
 0x123   : > { %v1904_v54 = vadd.f32 %v1782_v53, %v1742_v49  ;;  %v497_v55 = vpop.f32.mrb[1].mxu0 }
 0x124   : > { %v1905_v56 = vadd.f32 %v497_v55, %v283_v50  ;;  %v1783_v57 = vpop.f32.mrb[2].mxu0 }
 0x125   : > { %v516_v58 = vmin.f32 %v1904_v54, 20.0  ;;  %v500_v59 = vpop.f32.mrb[3].mxu0 }
 0x126   : > { %v514_v60 = vmin.f32 %v1905_v56, 20.0  ;;  %v1906_v61 = vadd.f32 %v500_v59, %v286_v52 }
 0x127   : > { %v521_v62 = vmul.f32 1.442695, %v516_v58 }
 0x128   : > { %v517_v63 = vmul.f32 1.442695, %v514_v60  ;;  %v515_v0 = vmin.f32 %v1906_v61, 20.0 }
 0x129   : > { %2044 = vpow2.f32 %v521_v62 }
 0x12a   : > { %2046 = vpow2.f32 %v517_v63  ;;  %v519_v1 = vmul.f32 1.442695, %v515_v0 }
 0x12c   : > { %2048 = vpow2.f32 %v519_v1 }
 0x133   : > { %v2045_v2 = vpop.eup %2044 }
 0x134   : > { %v2047_v3 = vpop.eup %2046  ;;  %v525_v4 = vadd.f32 1.0, %v2045_v2 }
 0x135   : > { %v523_v5 = vadd.f32 1.0, %v2047_v3 }
 0x136   : > { %v2049_v6 = vpop.eup %2048  ;;  %v528_v7 = vmul.f32 %v525_v4, %v525_v4 }
 0x137   : > { %v526_v8 = vmul.f32 %v523_v5, %v523_v5  ;;  %v524_v9 = vadd.f32 1.0, %v2049_v6 }
 0x138   : > { %v531_v10 = vadd.f32 1.0, %v528_v7  ;;  %v1501_v17 = vadd.f32 -1.0, %v528_v7 }
 0x139   : > { %v529_v11 = vadd.f32 1.0, %v526_v8  ;;  %v527_v12 = vmul.f32 %v524_v9, %v524_v9  ;;  %v1499_v19 = vadd.f32 -1.0, %v526_v8 }
 0x13a   : > { %2050 = vrcp.f32 %v531_v10  ;;  %v549_v26 = vmul.f32 %v1904_v54, %v1501_v17 }
 0x13b   : > { %2052 = vrcp.f32 %v529_v11  ;;  %v530_v13 = vadd.f32 1.0, %v527_v12  ;;  %v1500_v24 = vadd.f32 -1.0, %v527_v12  ;;  %v547_v28 = vmul.f32 %v1905_v56, %v1499_v19 }
 0x13d   : > { %2054 = vrcp.f32 %v530_v13  ;;  %v548_v34 = vmul.f32 %v1906_v61, %v1500_v24 }
 0x144   : > { %v2051_v14 = vpop.eup %2050 }
 0x145   : > { %v2053_v15 = vpop.eup %2052  ;;  %v537_v16 = vmul.f32 %v2051_v14, %v531_v10 }
 0x146   : > { %v535_v18 = vmul.f32 %v2053_v15, %v529_v11 }
 0x147   : > { %v2055_v20 = vpop.eup %2054  ;;  %v540_v21 = vsub.f32 2.0, %v537_v16 }
 0x148   : > { %v538_v22 = vsub.f32 2.0, %v535_v18  ;;  %v536_v23 = vmul.f32 %v2055_v20, %v530_v13 }
 0x149   : > { %v543_v25 = vmul.f32 %v2051_v14, %v540_v21 }
 0x14a   : > { %v541_v27 = vmul.f32 %v2053_v15, %v538_v22  ;;  %v539_v29 = vsub.f32 2.0, %v536_v23 }
 0x14b   : > { %v552_v30 = vmul.f32 %v549_v26, %v543_v25 }
 0x14c   : > { %v550_v31 = vmul.f32 %v547_v28, %v541_v27  ;;  %v542_v32 = vmul.f32 %v2055_v20, %v539_v29 }
 0x14d   : > { %555 = vst [vmem:[%s2475_s21 + $0x10] sm:$0xff] %v552_v30 }
 0x14e   : > { %553 = vst [vmem:[%s2475_s21] sm:$0xff] %v550_v31  ;;  %v551_v35 = vmul.f32 %v548_v34, %v542_v32 }
 0x150   : > { %554 = vst [vmem:[%s2475_s21 + $0x8] sm:$0xff] %v551_v35 }
 0x161   : > { %v1842_v36 = vpop.f32.mrb[4].mxu1 }
 0x162   : > { %v917_v37 = vmin.f32 %v1842_v36, 20.0  ;;  %v898_v38 = vpop.f32.mrb[5].mxu1 }
 0x163   : > { %v915_v39 = vmin.f32 %v898_v38, 20.0  ;;  %v1843_v40 = vpop.f32.mrb[6].mxu1 }
 0x164   : > { %v922_v41 = vmul.f32 1.442695, %v917_v37  ;;  %v901_v42 = vpop.f32.mrb[7].mxu1 }
 0x165   : > { %v918_v43 = vmul.f32 1.442695, %v915_v39  ;;  %v916_v44 = vmin.f32 %v901_v42, 20.0 }
 0x166   : > { %2056 = vpow2.f32 %v922_v41 }
 0x167   : > { %2058 = vpow2.f32 %v918_v43  ;;  %v920_v33 = vmul.f32 1.442695, %v916_v44 }
 0x169   : > { %2060 = vpow2.f32 %v920_v33 }
 0x170   : > { %v2057_v45 = vpop.eup %2056 }
 0x171   : > { %v2059_v46 = vpop.eup %2058  ;;  %v926_v47 = vadd.f32 1.0, %v2057_v45 }
 0x172   : > { %v924_v48 = vadd.f32 1.0, %v2059_v46 }
 0x173   : > { %v2061_v49 = vpop.eup %2060  ;;  %v929_v50 = vmul.f32 %v926_v47, %v926_v47 }
 0x174   : > { %v927_v51 = vmul.f32 %v924_v48, %v924_v48  ;;  %v925_v52 = vadd.f32 1.0, %v2061_v49 }
 0x175   : > { %v932_v53 = vadd.f32 1.0, %v929_v50  ;;  %v1562_v60 = vadd.f32 -1.0, %v929_v50 }
 0x176   : > { %v930_v54 = vadd.f32 1.0, %v927_v51  ;;  %v928_v55 = vmul.f32 %v925_v52, %v925_v52  ;;  %v1560_v63 = vadd.f32 -1.0, %v927_v51 }
 0x177   : > { %2062 = vrcp.f32 %v932_v53  ;;  %v950_v12 = vmul.f32 %v1842_v36, %v1562_v60 }
 0x178   : > { %2064 = vrcp.f32 %v930_v54  ;;  %v931_v56 = vadd.f32 1.0, %v928_v55  ;;  %v1561_v8 = vadd.f32 -1.0, %v928_v55  ;;  %v948_v16 = vmul.f32 %v1560_v63, %v898_v38 }
 0x17a   : > { %2066 = vrcp.f32 %v931_v56  ;;  %v949_v22 = vmul.f32 %v1561_v8, %v901_v42 }
 0x181   : > { %v2063_v57 = vpop.eup %2062 }
 0x182   : > { %v2065_v58 = vpop.eup %2064  ;;  %v938_v59 = vmul.f32 %v2063_v57, %v932_v53  ;;  %v1902_v61 = vpop.f32.mrb[4].mxu0 }
 0x183   : > { %v936_v62 = vmul.f32 %v2065_v58, %v930_v54  ;;  %v1319_v0 = vmin.f32 %v1902_v61, 20.0  ;;  %v1300_v1 = vpop.f32.mrb[5].mxu0 }
 0x184   : > { %v2067_v2 = vpop.eup %2066  ;;  %v941_v3 = vsub.f32 2.0, %v938_v59  ;;  %v1317_v4 = vmin.f32 %v1300_v1, 20.0  ;;  %v1903_v5 = vpop.f32.mrb[6].mxu0 }
 0x185   : > { %v939_v6 = vsub.f32 2.0, %v936_v62  ;;  %v937_v7 = vmul.f32 %v2067_v2, %v931_v56  ;;  %v1324_v9 = vmul.f32 1.442695, %v1319_v0  ;;  %v1303_v10 = vpop.f32.mrb[7].mxu0 }
 0x186   : > { %v944_v11 = vmul.f32 %v2063_v57, %v941_v3  ;;  %v1320_v13 = vmul.f32 1.442695, %v1317_v4  ;;  %v1318_v14 = vmin.f32 %v1303_v10, 20.0 }
 0x187   : > { %v942_v15 = vmul.f32 %v2065_v58, %v939_v6  ;;  %v940_v17 = vsub.f32 2.0, %v937_v7  ;;  %2068 = vpow2.f32 %v1324_v9 }
 0x188   : > { %v953_v18 = vmul.f32 %v950_v12, %v944_v11  ;;  %2070 = vpow2.f32 %v1320_v13  ;;  %v1322_v19 = vmul.f32 1.442695, %v1318_v14 }
 0x189   : > { %v951_v20 = vmul.f32 %v948_v16, %v942_v15  ;;  %v943_v21 = vmul.f32 %v2067_v2, %v940_v17 }
 0x18a   : > { %1565 = vst [vmem:[%s2475_s21 + $0x28] sm:$0xff] %v953_v18  ;;  %2072 = vpow2.f32 %v1322_v19 }
 0x18b   : > { %1563 = vst [vmem:[%s2475_s21 + $0x18] sm:$0xff] %v951_v20  ;;  %v952_v23 = vmul.f32 %v949_v22, %v943_v21 }
 0x18d   : > { %1564 = vst [vmem:[%s2475_s21 + $0x20] sm:$0xff] %v952_v23 }
 0x191   : > { %v2069_v24 = vpop.eup %2068 }
 0x192   : > { %v2071_v25 = vpop.eup %2070  ;;  %v1328_v26 = vadd.f32 1.0, %v2069_v24 }
 0x193   : > { %v1326_v27 = vadd.f32 1.0, %v2071_v25 }
 0x194   : > { %v2073_v28 = vpop.eup %2072  ;;  %v1331_v29 = vmul.f32 %v1328_v26, %v1328_v26 }
 0x195   : > { %v1329_v30 = vmul.f32 %v1326_v27, %v1326_v27  ;;  %v1327_v31 = vadd.f32 1.0, %v2073_v28 }
 0x196   : > { %v1334_v32 = vadd.f32 1.0, %v1331_v29  ;;  %v1626_v40 = vadd.f32 -1.0, %v1331_v29 }
 0x197   : > { %v1332_v34 = vadd.f32 1.0, %v1329_v30  ;;  %v1330_v35 = vmul.f32 %v1327_v31, %v1327_v31  ;;  %v1624_v42 = vadd.f32 -1.0, %v1329_v30 }
 0x198   : > { %2074 = vrcp.f32 %v1334_v32  ;;  %v1352_v48 = vmul.f32 %v1902_v61, %v1626_v40 }
 0x199   : > { %2076 = vrcp.f32 %v1332_v34  ;;  %v1333_v36 = vadd.f32 1.0, %v1330_v35  ;;  %v1625_v46 = vadd.f32 -1.0, %v1330_v35  ;;  %v1350_v50 = vmul.f32 %v1624_v42, %v1300_v1 }
 0x19b   : > { %2078 = vrcp.f32 %v1333_v36  ;;  %v1351_v55 = vmul.f32 %v1625_v46, %v1303_v10 }
 0x1a2   : > { %v2075_v37 = vpop.eup %2074 }
 0x1a3   : > { %v2077_v38 = vpop.eup %2076  ;;  %v1340_v39 = vmul.f32 %v2075_v37, %v1334_v32 }
 0x1a4   : > { %v1338_v41 = vmul.f32 %v2077_v38, %v1332_v34 }
 0x1a5   : > { %v2079_v43 = vpop.eup %2078  ;;  %v1343_v44 = vsub.f32 2.0, %v1340_v39 }
 0x1a6   : > { %v1341_v33 = vsub.f32 2.0, %v1338_v41  ;;  %v1339_v45 = vmul.f32 %v2079_v43, %v1333_v36 }
 0x1a7   : > { %v1346_v47 = vmul.f32 %v2075_v37, %v1343_v44 }
 0x1a8   : > { %v1344_v49 = vmul.f32 %v2077_v38, %v1341_v33  ;;  %v1342_v51 = vsub.f32 2.0, %v1339_v45 }
 0x1a9   : > { %v1355_v52 = vmul.f32 %v1352_v48, %v1346_v47 }
 0x1aa   : > { %v1353_v53 = vmul.f32 %v1350_v50, %v1344_v49  ;;  %v1345_v54 = vmul.f32 %v2079_v43, %v1342_v51 }
 0x1ab   : > { %1629 = vst [vmem:[%s2475_s21 + $0x40] sm:$0xff] %v1355_v52 }
 0x1ac   : > { %1627 = vst [vmem:[%s2475_s21 + $0x30] sm:$0xff] %v1353_v53  ;;  %v1354_v56 = vmul.f32 %v1351_v55, %v1345_v54 }
 0x1ae   : > { %1628 = vst [vmem:[%s2475_s21 + $0x38] sm:$0xff] %v1354_v56 }
 0x1af   : > { %2093 = shalt.err (!%p2090_p3)
}
 0x1b0   : > { %s2094_s4 = scalar_lea.hbm %s2489_s27, 1152  ;;  %s2098_s6 = scalar_lea.hbm %s2540_s2, 2304 }
 0x1b1   : > { %p2095_p4 = scmp.ne.s32.totalorder %s2489_s27, %s2094_s4  ;;  %p2099_p9 = scmp.lt.u32.totalorder %s2489_s27, %s2540_s2 }
 0x1b2   : > { %p2100_p10 = scmp.lt.u32.totalorder %s2098_s6, %s2094_s4  ;;  %p2102_p12 = scmp.lt.u32.totalorder %s2094_s4, %s2489_s27 }
 0x1b3   : > { %p2096_p7 = pnand %p2095_p4, %p2202_p5 }
 0x1b4   : > { %p2101_p11 = por %p2100_p10, %p2099_p9 }
 0x1b5   : > { %p2097_p8 = pneg %p2096_p7 }
 0x1b6   : > { %p2103_p13 = por %p2102_p12, %p2101_p11 }
 0x1b8   : > { %p2104_p0 = pnand %p2103_p13, %p2097_p8 }
 0x1ba   : > { %2107 = shalt.err (!%p2104_p0)
}
 0x1bb   : > { %s2147_s14 = smov 128   ;;  %s2148_s16 = smov 8  }
 0x1bc   : > { %1929 = dma.vmem_to_hbm [thread:$0]  (%p2202_p5), %s2491_s24, 1152, %s2489_s27, %s2497_s13, %s2147_s14, %s2147_s14, %s2148_s16  }
 0x1bd PF: > { %p1936_p1 = scmp.ge.s32.totalorder %s2142_s12, 2  ;;  %s1390_s17 = sand.u32 1, %s2130_s9  }
 0x1be   : > { %s1391_s21 = scalar_lea.sflag [#allocation4], %s1390_s17 }
 0x1bf   : > { %p1932_p2 = pnand %p1936_p1, %p2206_p6 }
 0x1c1   : > { %2125 = dma.done.wait (!%p1932_p2), %s1391_s21, 1152  }
 0x1c2   : > { %2127 = vsyncadd (!%p1932_p2), %s1391_s21, 4294966144  ;;  %p12_p3 = scmp.ge.s32.totalorder %s2189_s15, 4   ;;  %s2544_s9 = smov %s2134_s10 }
 0x1c3   : > { %s2545_s10 = smov %s2138_s11  ;;  %s2546_s11 = smov %s2200_s18 }
 0x1c4   : > { %s2547_s12 = smov %s2189_s15  ;;  %14 = sbr.rel (!%p12_p3) target bundleno = 3 (0x3), region = 70 }
 0x1cb   :  { %1396 = vsyncpa [#allocation4], 1 }
 0x1cc   :  { %1398 = vsyncpa [#allocation4 + $0x1], 1 }

</bundles_post_ra>
